<compile_context>
chip_gen: v6e
topology: v6e:2x2x1
jax: 0.10.0
libtpu: 0.0.40
codegen_flags: <defaults>
</compile_context>

<pallas_src>
import functools

import jax
import jax.numpy as jnp
from jax import lax
from jax.experimental import pallas as pl
from jax.experimental.pallas import tpu as pltpu


# ---------------------------------------------------------------------------
# Kernel body
# ---------------------------------------------------------------------------

def _ln_kernel(x_ref, *rest, eps: float, inv_c: float, affine: bool, mxu_sums: bool):
    """LayerNorm over the C (sublane) axis of one (C, Tt) tile."""
    if affine:
        wb_ref, o_ref = rest
    else:
        (o_ref,) = rest

    xf = x_ref[...].astype(jnp.float32)                      # (C, Tt), fp32 stats
    c = xf.shape[0]

    if mxu_sums:
        # v7x: push the column reductions onto the otherwise-idle MXU
        # (vector-extended slot) to keep the 4 VALU slots free.
        ones_row = jnp.ones((1, c), dtype=jnp.float32)

        def _colsum(v):
            return jnp.dot(ones_row, v,
                           preferred_element_type=jnp.float32,
                           precision=lax.Precision.HIGHEST)
    else:
        def _colsum(v):
            return jnp.sum(v, axis=0, keepdims=True)

    s1 = _colsum(xf)                                         # (1, Tt)
    mu = s1 * inv_c
    d = xf - mu                                              # reused for the output
    s2 = _colsum(d * d)                                      # biased variance * C
    inv = lax.rsqrt(s2 * inv_c + eps)                        # EUP rsqrt

    out = d * inv
    if affine:
        wb = wb_ref[...].astype(jnp.float32)                 # packed (C, 2): [w | b]
        out = out * wb[:, 0:1] + wb[:, 1:2]
    # NOTE: on v7x with bf16 I/O the elementwise chain could run packed in bf16
    # (stats kept f32) for extra VALU headroom; kept in f32 here so numerics match
    # the PyTorch reference on every generation.
    o_ref[...] = out.astype(o_ref.dtype)


# ---------------------------------------------------------------------------
# Per-generation planning (VMEM capacity, tile size, vmem limit)
# ---------------------------------------------------------------------------

def _tpu_generation():
    """Return (vmem_capacity_bytes, is_v7x) with safe fallbacks."""
    kind = ""
    try:
        kind = jax.devices()[0].device_kind.lower()
    except Exception:
        pass
    vmem_cap = 0
    try:
        vmem_cap = int(pltpu.get_tpu_info().vmem_capacity_bytes)
    except Exception:
        vmem_cap = 0
    if vmem_cap <= 0:
        if "7" in kind:
            vmem_cap = 64 * 1024 * 1024          # v7x: 64 MiB per TensorCore
        elif ("v2" in kind) or ("v3" in kind):
            vmem_cap = 16 * 1024 * 1024
        else:
            vmem_cap = 128 * 1024 * 1024         # v4 / v5e / v6e
    is_v7x = ("7" in kind) or (vmem_cap == 64 * 1024 * 1024)
    return vmem_cap, is_v7x


def _wb_pad_bytes(C: int) -> int:
    # Packed (C, 2) f32 weight+bias block: lanes pad to 128, sublanes to 8;
    # assume the pipeline double-buffers it.
    return 2 * (-(-C // 8) * 8) * 128 * 4


def _live_bytes(C: int, tt: int, itemsize: int, affine: bool) -> int:
    # 2x double-buffered input + 2x double-buffered output + ~2 fp32 temporaries.
    tt_pad = -(-tt // 128) * 128
    per_elem = 4 * itemsize + 8
    return C * tt_pad * per_elem + (_wb_pad_bytes(C) if affine else 0) + (2 << 20)


def _choose_tile_t(B: int, C: int, T: int, itemsize: int, affine: bool,
                   vmem_cap: int, is_v7x: bool) -> int:
    """Pick the lane tile Tt (multiple of 128, or full T when T <= 128)."""
    if T <= 128:
        return T
    padded_T = -(-T // 128) * 128
    limit = (3 * vmem_cap) // 4
    per_elem = 4 * itemsize + 8
    wb = _wb_pad_bytes(C) if affine else 0

    # Biggest tile whose live working set stays ~70% of the scoped limit.
    budget = max(int(0.70 * limit) - wb, C * 128 * per_elem)
    tt = max(128, (budget // (C * per_elem)) // 128 * 128)

    # HBM burst-contiguity floor: each DMA row of a (C, tt) block is only
    # tt*itemsize contiguous bytes (stride T*itemsize) -- keep it >= ~1 KiB.
    floor_tt = max(128, min(-(-(1024 // itemsize) // 128) * 128, padded_T))
    tt = max(tt, floor_tt)

    if tt >= T:
        tt = T
    elif is_v7x:
        # Both v7x TensorCores share the "parallel" grid axes -- keep enough
        # steps for each to pipeline.
        while B * pl.cdiv(T, tt) < 16 and tt - 128 >= floor_tt:
            tt -= 128

    # Never exceed what fits (with headroom) in physical VMEM.
    hard_cap = (15 * vmem_cap) // 16
    while tt > 128 and _live_bytes(C, tt, itemsize, affine) > hard_cap:
        nt = (-(-tt // 128) - 1) * 128
        if nt < 128 or nt >= tt:
            break
        tt = nt
    return tt


def _vmem_limit_bytes(C: int, tt: int, itemsize: int, affine: bool, vmem_cap: int) -> int:
    limit = max((3 * vmem_cap) // 4,
                int(_live_bytes(C, tt, itemsize, affine) * 1.25))
    return int(min(limit, (15 * vmem_cap) // 16))


# ---------------------------------------------------------------------------
# Public wrapper
# ---------------------------------------------------------------------------

def layer_norm_bct(x, weight=None, bias=None, *, eps: float = 1e-5,
                   tile_t=None, mxu_sums=None):
    """LayerNorm over channels of a (B, C, T) array (PyTorch-module semantics)."""
    assert x.ndim == 3
    B, C, T = x.shape
    affine = weight is not None
    if affine:
        assert bias is not None
    itemsize = jnp.dtype(x.dtype).itemsize

    vmem_cap, is_v7x = _tpu_generation()
    if tile_t is not None:
        tt = max(1, min(int(tile_t), T))
    else:
        tt = _choose_tile_t(B, C, T, itemsize, affine, vmem_cap, is_v7x)
    if mxu_sums is None:
        mxu_sums = bool(is_v7x and C >= 8 and (tt % 128 == 0))

    grid = (B, pl.cdiv(T, tt))

    # Leading batch dim is squeezed out of the kernel refs (block size 1).
    x_spec = pl.BlockSpec((None, C, tt), lambda b, t: (b, 0, t))
    out_spec = pl.BlockSpec((None, C, tt), lambda b, t: (b, 0, t))
    # TODO(synk): on v7x, if profiles show exposed DMA at step boundaries, add
    # pipeline_mode=pl.Buffered(3) to x_spec (and budget one extra block of VMEM).

    vmem_limit = _vmem_limit_bytes(C, tt, itemsize, affine, vmem_cap)
    cparams = pltpu.CompilerParams(
        dimension_semantics=("parallel", "parallel"),
        vmem_limit_bytes=int(vmem_limit),
    )
    cost = pl.CostEstimate(
        flops=9 * B * C * T,
        transcendentals=B * T,
        bytes_accessed=2 * B * C * T * itemsize + (8 * C if affine else 0),
    )

    kernel = functools.partial(_ln_kernel, eps=float(eps), inv_c=1.0 / C,
                               affine=affine, mxu_sums=mxu_sums)

    if affine:
        # Pack weight and bias into one resident, lane-padded (C, 2) f32 block.
        wb = jnp.concatenate(
            [jnp.asarray(weight, jnp.float32).reshape(C, 1),
             jnp.asarray(bias, jnp.float32).reshape(C, 1)], axis=1)
        in_specs = [x_spec, pl.BlockSpec((C, 2), lambda b, t: (0, 0))]
        args = (x, wb)
    else:
        in_specs = [x_spec]
        args = (x,)

    return pl.pallas_call(
        kernel,
        out_shape=jax.ShapeDtypeStruct((B, C, T), x.dtype),
        grid=grid,
        in_specs=in_specs,
        out_specs=out_spec,
        compiler_params=cparams,
        cost_estimate=cost,
    )(*args)


def _reference(x, weight=None, bias=None, eps: float = 1e-5):
    mu = jnp.mean(x, axis=1, keepdims=True)
    res = x - mu
    sigma = jnp.mean(res * res, axis=1, keepdims=True)
    out = res / jnp.sqrt(sigma + eps)
    if weight is not None:
        out = out * weight + bias
    return out


if __name__ == "__main__":
    key = jax.random.PRNGKey(0)
    k1, k2, k3, k4, k5, k6 = jax.random.split(key, 6)

    # Case 1: module-default small shape, affine=True (ones/zeros init), f32.
    B, C, T = 2, 4, 16
    x = jax.random.normal(k1, (B, C, T), dtype=jnp.float32)
    w = jnp.ones((1, C, 1), dtype=jnp.float32)
    b = jnp.zeros((1, C, 1), dtype=jnp.float32)
    out = jax.block_until_ready(layer_norm_bct(x, w, b, eps=1e-5))
    ref = _reference(x, w, b, eps=1e-5)
    assert out.shape == (B, C, T)
    assert jnp.allclose(out, ref, atol=1e-4, rtol=1e-4), "mismatch (case 1)"

    # Case 2: lane-tiled path with a padded edge block (T % tile != 0).
    B2, C2, T2 = 2, 8, 200
    x2 = jax.random.normal(k2, (B2, C2, T2), dtype=jnp.float32)
    w2 = jax.random.normal(k3, (1, C2, 1), dtype=jnp.float32)
    b2 = jax.random.normal(k4, (1, C2, 1), dtype=jnp.float32)
    out2 = jax.block_until_ready(layer_norm_bct(x2, w2, b2, eps=1e-5, tile_t=128))
    ref2 = _reference(x2, w2, b2, eps=1e-5)
    assert jnp.allclose(out2, ref2, atol=1e-4, rtol=1e-4), "mismatch (case 2)"

    # Case 3: affine=False path (no weight/bias inputs at all).
    x3 = jax.random.normal(k3, (B, C, T), dtype=jnp.float32)
    out3 = jax.block_until_ready(layer_norm_bct(x3, eps=1e-5))
    ref3 = _reference(x3, eps=1e-5)
    assert jnp.allclose(out3, ref3, atol=1e-4, rtol=1e-4), "mismatch (case 3)"

    # Case 4: MXU column-sum path forced on (MXU-friendly tile), any generation.
    B4, C4, T4 = 1, 256, 256
    x4 = jax.random.normal(k5, (B4, C4, T4), dtype=jnp.float32)
    w4 = jax.random.normal(k6, (1, C4, 1), dtype=jnp.float32)
    b4 = jax.random.normal(k1, (1, C4, 1), dtype=jnp.float32)
    out4 = jax.block_until_ready(
        layer_norm_bct(x4, w4, b4, eps=1e-5, tile_t=128, mxu_sums=True))
    ref4 = _reference(x4, w4, b4, eps=1e-5)
    assert jnp.allclose(out4, ref4, atol=2e-3, rtol=2e-3), "mismatch (case 4)"

    # Case 5: bf16 I/O (stats and elementwise stay f32 in-kernel; only the store is bf16).
    B5, C5, T5 = 2, 16, 256
    x5 = jax.random.normal(k2, (B5, C5, T5), dtype=jnp.float32).astype(jnp.bfloat16)
    w5 = jnp.ones((1, C5, 1), dtype=jnp.bfloat16)
    b5 = jnp.zeros((1, C5, 1), dtype=jnp.bfloat16)
    out5 = jax.block_until_ready(layer_norm_bct(x5, w5, b5, eps=1e-5))
    ref5 = _reference(x5.astype(jnp.float32), w5.astype(jnp.float32),
                      b5.astype(jnp.float32), eps=1e-5)
    assert jnp.allclose(out5.astype(jnp.float32), ref5, atol=6e-2, rtol=6e-2), \
        "mismatch (case 5)"

    print("KERNEL_OK")
</pallas_src>

<mosaic_0001>
module attributes {stable_mosaic.version = 11 : i64} {
  func.func @_ln_kernel(%arg0: i32, %arg1: i32, %arg2: memref<1x4x16xf32, #tpu.memory_space<vmem>>, %arg3: memref<4x2xf32, #tpu.memory_space<vmem>>, %arg4: memref<1x4x16xf32, #tpu.memory_space<vmem>>) attributes {dimension_semantics = [#tpu.dimension_semantics<parallel>, #tpu.dimension_semantics<parallel>], iteration_bounds = array<i64: 2, 1>, scalar_prefetch = 0 : i64, scratch_operands = 0 : i64, tpu.core_type = #tpu.core_type<tc>, window_params = [{transform_indices = @transform_0, window_bounds = array<i64: 1, 4, 16>}, {pipeline_mode = #tpu.pipeline_mode<synchronous>, transform_indices = @transform_1, window_bounds = array<i64: 4, 2>}, {transform_indices = @transform_2, window_bounds = array<i64: 1, 4, 16>}]} {
    %c0 = arith.constant 0 : index
    %c0_0 = arith.constant 0 : index
    %c0_1 = arith.constant 0 : index
    %0 = vector.load %arg2[%c0, %c0_0, %c0_1] : memref<1x4x16xf32, #tpu.memory_space<vmem>>, vector<1x4x16xf32>
    %1 = vector.shape_cast %0 : vector<1x4x16xf32> to vector<4x16xf32>
    %cst = arith.constant dense<0.000000e+00> : vector<16xf32>
    %2 = vector.multi_reduction <add>, %1, %cst [0] : vector<4x16xf32> to vector<16xf32>
    %3 = vector.shape_cast %2 : vector<16xf32> to vector<1x16xf32>
    %cst_2 = arith.constant 2.500000e-01 : f32
    %4 = vector.broadcast %cst_2 : f32 to vector<1x16xf32>
    %5 = arith.mulf %3, %4 : vector<1x16xf32>
    %6 = vector.broadcast %5 : vector<1x16xf32> to vector<4x16xf32>
    %7 = arith.subf %1, %6 : vector<4x16xf32>
    %8 = arith.mulf %7, %7 : vector<4x16xf32>
    %cst_3 = arith.constant dense<0.000000e+00> : vector<16xf32>
    %9 = vector.multi_reduction <add>, %8, %cst_3 [0] : vector<4x16xf32> to vector<16xf32>
    %10 = vector.shape_cast %9 : vector<16xf32> to vector<1x16xf32>
    %cst_4 = arith.constant 2.500000e-01 : f32
    %11 = vector.broadcast %cst_4 : f32 to vector<1x16xf32>
    %12 = arith.mulf %10, %11 : vector<1x16xf32>
    %cst_5 = arith.constant 9.99999974E-6 : f32
    %13 = vector.broadcast %cst_5 : f32 to vector<1x16xf32>
    %14 = arith.addf %12, %13 : vector<1x16xf32>
    %15 = math.rsqrt %14 : vector<1x16xf32>
    %16 = vector.broadcast %15 : vector<1x16xf32> to vector<4x16xf32>
    %17 = arith.mulf %7, %16 : vector<4x16xf32>
    %c0_6 = arith.constant 0 : index
    %c0_7 = arith.constant 0 : index
    %18 = vector.load %arg3[%c0_6, %c0_7] : memref<4x2xf32, #tpu.memory_space<vmem>>, vector<4x2xf32>
    %19 = vector.extract_strided_slice %18 {offsets = [0, 0], sizes = [4, 1], strides = [1, 1]} : vector<4x2xf32> to vector<4x1xf32>
    %20 = vector.broadcast %19 : vector<4x1xf32> to vector<4x16xf32>
    %21 = arith.mulf %17, %20 : vector<4x16xf32>
    %22 = vector.extract_strided_slice %18 {offsets = [0, 1], sizes = [4, 1], strides = [1, 1]} : vector<4x2xf32> to vector<4x1xf32>
    %23 = vector.broadcast %22 : vector<4x1xf32> to vector<4x16xf32>
    %24 = arith.addf %21, %23 : vector<4x16xf32>
    %c0_8 = arith.constant 0 : index
    %c0_9 = arith.constant 0 : index
    %c0_10 = arith.constant 0 : index
    %25 = vector.load %arg4[%c0_8, %c0_9, %c0_10] : memref<1x4x16xf32, #tpu.memory_space<vmem>>, vector<1x4x16xf32>
    %26 = vector.shape_cast %25 : vector<1x4x16xf32> to vector<4x16xf32>
    %27 = vector.shape_cast %24 : vector<4x16xf32> to vector<1x4x16xf32>
    tpu.vector_store %arg4[%c0_8, %c0_9, %c0_10], %27 {strides = array<i32>} : memref<1x4x16xf32, #tpu.memory_space<vmem>>, vector<1x4x16xf32>,
    return
  }
  func.func @transform_0(%arg0: i32, %arg1: i32) -> (i32, i32, i32) {
    %c0_i32 = arith.constant 0 : i32
    %c0_i32_0 = arith.constant 0 : i32
    return %arg0, %c0_i32, %arg1 : i32, i32, i32
  }
  func.func @transform_1(%arg0: i32, %arg1: i32) -> (i32, i32) {
    %c0_i32 = arith.constant 0 : i32
    %c0_i32_0 = arith.constant 0 : i32
    %c0_i32_1 = arith.constant 0 : i32
    return %c0_i32, %c0_i32_0 : i32, i32
  }
  func.func @transform_2(%arg0: i32, %arg1: i32) -> (i32, i32, i32) {
    %c0_i32 = arith.constant 0 : i32
    %c0_i32_0 = arith.constant 0 : i32
    return %arg0, %c0_i32, %arg1 : i32, i32, i32
  }
}

</mosaic_0001>

<bundles_post_ra>
// kernel: tpu_custom_call.1
= control target key start
LH: loop header
LB: loop body
LE: loop exit
PB: predicated region body
PF: predicated region fallthrough
CT: control target
= control target key end

     0   :  { %7 = vsyncpa [#allocation3], 0  ;;  %s661_s0 = inlined_call_operand.hbm [shape: f32[2,4,16], index: 0, kind: input, shape index: {}]   ;;  %s662_s1 = inlined_call_operand.vmem [shape: f32[4,2], index: 1, kind: input, shape index: {}]   ;;  %s663_s2 = inlined_call_operand.hbm [shape: f32[2,4,16], index: 2, kind: output, shape index: {}]  }
   0x1   :  { %9 = vsyncpa [#allocation3 + $0x1], 0 }
   0x2   :  { %10 = vsyncpa [#allocation4], 0 }
   0x3   :  { %12 = vsyncpa [#allocation4 + $0x1], 0  ;;  %s517_s9 = smov 0   ;;  %s519_s10 = smov 0  }
   0x4   :  { %s521_s11 = smov 0   ;;  %s523_s12 = smov 0  }
   0x5   :  { %s525_s13 = smov 0   ;;  %s527_s14 = smov 0  }
   0x6 LB: > { %s307_s15 = sadd.s32 4294967295, %s496_s14   ;;  %s308_s16 = sadd.s32 4294967294, %s496_s14   ;;  %s496_s14 = sphi %s527_s14, %s18_s14   ;;  %s492_s13 = sphi %s525_s13, %s675_s13   ;;  %s488_s12 = sphi %s523_s12, %s674_s12   ;;  %s484_s11 = sphi %s521_s11, %s673_s11   ;;  %s480_s10 = sphi %s519_s10, %s672_s10   ;;  %s476_s9 = sphi %s517_s9, %s671_s9  }
   0x7   : > { %s30_s17 = sadd.s32 1, %s492_s13  ;;  %s39_s18 = sadd.s32 1, %s484_s11 }
   0x8   : > { %p32_p0 = scmp.ge.s32.totalorder %s30_s17, 2  ;;  %p46_p1 = scmp.ne.s32.totalorder %s484_s11, %s480_s10 }
   0x9   : > { %p47_p2 = scmp.eq.s32.totalorder %s496_s14, 0  ;;  %p52_p3 = scmp.ne.s32.totalorder %s480_s10, %s476_s9 }
   0xa   : > { %s677_s17 = smov (%p32_p0, %s30_s17), 0  ;;  %p53_p5 = scmp.eq.s32.totalorder %s307_s15, 0 }
   0xb   : > { %p558_p4 = por %p47_p2, %p46_p1  ;;  %s34_s20 = ssub.s32 %s492_s13, %s677_s17 }
   0xc   : > { %p99_p6 = scmp.eq.s32.totalorder %s307_s15, 1  ;;  %p37_p7 = scmp.eq.s32.totalorder %s34_s20, 0 }
   0xd   : > { %p564_p8 = por %p53_p5, %p52_p3  ;;  %p105_p10 = scmp.eq.s32.totalorder %s308_s16, 1 }
   0xe   : > { %p568_p9 = por %p99_p6, %p46_p1  ;;  %p332_p13 = scmp.lt.s32.totalorder %s496_s14, 2 }
   0xf   : > { %s573_s23 = scalar_select %p37_p7, %s484_s11, %s39_s18  }
  0x10   : > { %p575_p11 = por %p105_p10, %p52_p3  ;;  %s128_s25 = sand.u32 1, %s484_s11  }
  0x11   : > { %s311_s26 = sshll.u32 %s128_s25, 2  ;;  %s312_s27 = sshll.u32 %s492_s13, 6 }
  0x12   : > { %s667_s24 = scalar_select %p575_p11, 1, 0 }
  0x13   : > { %s138_s30 = scalar_lea.hbm %s661_s0, %s312_s27  ;;  %s132_s3 = scalar_lea.vmem [#allocation2], %s311_s26 }
  0x14   : > { %s140_s4 = sshll.u32 %s132_s3, 4  ;;  %p588_p0 = pnand %p332_p13, %p558_p4  ;;  %s141_s4 = int_to_ptr.vmem [resolvable:$true] %s140_s4 }
  0x15   : > { %p313_p1 = scmp.ge.s32.totalorder %s496_s14, 1  ;;  %p145_p2 = scmp.lt.s32.totalorder %s496_s14, 3 }
  0x16   : > { %s129_s6 = scalar_lea.sflag [#allocation3], %s128_s25  ;;  %p390_p3 = pneg %p588_p0 }
  0x17   : > { %s401_s7 = scalar_lea.vmem %s141_s4, 64  ;;  %s498_s8 = smov [#allocation2]  }
  0x18   : > { %p402_p5 = scmp.ne.s32.totalorder %s141_s4, %s401_s7  ;;  %s406_s15 = sshll.u32 %s498_s8, 4  ;;  %s407_s15 = int_to_ptr.vmem [resolvable:$false] %s406_s15 }
  0x19   : > { %s408_s16 = scalar_lea.vmem %s407_s15, 128  ;;  %p409_p10 = scmp.lt.s32.totalorder %s141_s4, %s407_s15 }
  0x1a   : > { %p404_p6 = pnand %p402_p5, %p390_p3  ;;  %p410_p12 = scmp.lt.s32.totalorder %s408_s16, %s401_s7 }
  0x1c   : > { %p405_p7 = pneg %p404_p6  ;;  %p411_p4 = por %p410_p12, %p409_p10 }
  0x1e   : > { %p412_p13 = pnand %p411_p4, %p405_p7 }
  0x20   : > { %415 = shalt.err (!%p412_p13)
}
  0x21   : > { %327 = dma.hbm_to_vmem [thread:$0]  (!%p588_p0), %s138_s30, 64, %s141_s4, %s129_s6  }
  0x22   : > { %p146_p11 = pnand %p313_p1, %p145_p2 }
  0x23   : > { %s603_s18 = sand.u32 (!%p146_p11), 1, %s480_s10  }
  0x24   : > { %149 = sbr.rel (%p146_p11) target bundleno = 188 (0xbc), region = 28  ;;  %s314_s19 = sshll.u32 (!%p146_p11), %s603_s18, 2 }
  0x25   : > { %s152_s20 = scalar_lea.sflag (!%p146_p11), [#allocation3], %s603_s18  ;;  %s155_s25 = scalar_lea.vmem (!%p146_p11), [#allocation2], %s314_s19 }
  0x29   : > { %467 = dma.done.wait (%p564_p8), %s152_s20, 64  }
  0x2a   : > { %469 = vsyncadd (%p564_p8), %s152_s20, 4294967232  ;;  %v499_v0 = vmov 0   ;;  %v199_v1 = vld [vmem:[%s662_s1] sm:$0xf]  ;;  %v500_v2 = vmov 1   ;;  %vm177_vm0 = vcmask 125952  }
  0x2b   : > { %384 = vset.pattern.permute.xlu0 %v499_v0  ;;  %v176_v3 = vld [vmem:[%s155_s25] sm:$0xf]  ;;  %s317_s21 = sshll.u32 %s488_s12, 6  ;;  %s175_s28 = scalar_lea.vmem [#allocation5], %s314_s19 }
  0x2c   : > { %202 = vperm.xlu0 %384, %v199_v1   ;;  %v178_v4 = vsel %vm177_vm0, %v176_v3, 0.0  ;;  %s227_s29 = sshll.u32 %s175_s28, 4  ;;  %s225_s4 = scalar_lea.hbm %s663_s2, %s317_s21  ;;  %s228_s29 = int_to_ptr.vmem [resolvable:$true] %s227_s29 }
  0x2d   : > { %v179_v5 = vrot.slane %v178_v4, 4  ;;  %s213_s5 = scalar_lea.sflag [#allocation4], %s603_s18  ;;  %s416_s6 = scalar_lea.vmem %s228_s29, 64 }
  0x2e   : > { %p417_p8 = scmp.ne.s32.totalorder %s228_s29, %s416_s6  ;;  %s501_s12 = smov [#allocation5]  }
  0x2f   : > { %v180_v6 = vadd.f32 %v179_v5, %v178_v4  ;;  %s420_s7 = sshll.u32 %s501_s12, 4  ;;  %s421_s7 = int_to_ptr.vmem [resolvable:$false] %s420_s7 }
  0x30   : > { %385 = vset.pattern.permute.xlu0 %v500_v2  ;;  %p418_p11 = pnand %p417_p8, %p568_p9  ;;  %s422_s8 = scalar_lea.vmem %s421_s7, 128 }
  0x31   : > { %207 = vperm.xlu0 %385, %v199_v1   ;;  %v181_v7 = vrot.slane %v180_v6, 2  ;;  %p423_p0 = scmp.lt.s32.totalorder %s228_s29, %s421_s7  ;;  %p424_p1 = scmp.lt.s32.totalorder %s422_s8, %s416_s6 }
  0x32   : > { %p419_p12 = pneg %p418_p11 }
  0x33   : > { %v182_v8 = vadd.f32 %v181_v7, %v180_v6  ;;  %p425_p2 = por %p424_p1, %p423_p0 }
  0x35   : > { %v183_v9 = vrot.slane %v182_v8, 1  ;;  %p426_p3 = pnand %p425_p2, %p419_p12 }
  0x37   : > { %v184_v10 = vadd.f32 %v183_v9, %v182_v8 }
  0x39   : > { %v185_v11 = vmul.f32 0.25, %v184_v10 }
  0x3b   : > { %v186_v12 = vsub.f32 %v176_v3, %v185_v11 }
  0x3d   : > { %v187_v13 = vmul.f32 %v186_v12, %v186_v12 }
  0x3f   : > { %v188_v14 = vsel %vm177_vm0, %v187_v13, 0.0 }
  0x40   : > { %v189_v15 = vrot.slane %v188_v14, 4 }
  0x42   : > { %v190_v16 = vadd.f32 %v189_v15, %v188_v14 }
  0x44   : > { %v191_v17 = vrot.slane %v190_v16, 2 }
  0x46   : > { %v192_v18 = vadd.f32 %v191_v17, %v190_v16 }
  0x48   : > { %v193_v19 = vrot.slane %v192_v18, 1 }
  0x4a   : > { %v194_v20 = vadd.f32 %v193_v19, %v192_v18 }
  0x4c   : > { %v195_v21 = vmul.f32 0.25, %v194_v20 }
  0x4e   : > { %v196_v22 = vadd.f32 1e-05, %v195_v21 }
  0x50   : > { %386 = vrsqrt.f32 %v196_v22 }
  0x5d   : > { %v387_v23 = vpop.eup %386 }
  0x5e   : > { %v198_v25 = vmul.f32 %v387_v23, %v186_v12 }
  0xa7   : > { %v203_v24 = vpop.permute.xlu0 %202 }
  0xa8   : > { %v205_v26 = vmul.f32 %v203_v24, %v198_v25 }
  0xac   : > { %v208_v27 = vpop.permute.xlu0 %207 }
  0xad   : > { %v210_v28 = vadd.f32 %v208_v27, %v205_v26 }
  0xaf   : > { %211 = vst.msk [vmem:[%s175_s28] sm:$0xf] %vm177_vm0, %v210_v28 }
  0xb0   : > { %429 = shalt.err (!%p426_p3)
}
  0xb1   : > { %s430_s15 = scalar_lea.hbm %s225_s4, 64  ;;  %s434_s19 = scalar_lea.hbm %s663_s2, 128 }
  0xb2   : > { %p431_p5 = scmp.ne.s32.totalorder %s225_s4, %s430_s15  ;;  %p435_p10 = scmp.lt.s32.totalorder %s225_s4, %s663_s2 }
  0xb3   : > { %p436_p4 = scmp.lt.s32.totalorder %s434_s19, %s430_s15 }
  0xb4   : > { %p432_p6 = pnand %p431_p5, %p568_p9 }
  0xb5   : > { %p437_p13 = por %p436_p4, %p435_p10 }
  0xb6   : > { %p433_p7 = pneg %p432_p6 }
  0xb8   : > { %p438_p8 = pnand %p437_p13, %p433_p7 }
  0xba   : > { %441 = shalt.err (!%p438_p8)
}
  0xbb   : > { %322 = dma.vmem_to_hbm [thread:$0]  (%p568_p9), %s228_s29, 64, %s225_s4, %s213_s5  }
  0xbc PF: > { %s239_s26 = sand.u32 1, %s476_s9   ;;  %p669_p11 = scmp.ne.s32.totalorder %s667_s24, 0 }
  0xbd   : > { %p670_p12 = scmp.ge.s32.totalorder %s496_s14, 2  ;;  %s240_s27 = scalar_lea.sflag [#allocation4], %s239_s26 }
  0xbf   : > { %p329_p0 = pnand %p670_p12, %p669_p11 }
  0xc1   : > { %p330_p1 = pneg %p329_p0 }
  0xc3   : > { %471 = dma.done.wait (%p330_p1), %s240_s27, 64  }
  0xc4   : > { %473 = vsyncadd (%p330_p1), %s240_s27, 4294967232  ;;  %s18_s14 = sadd.s32 1, %s496_s14   ;;  %s671_s9 = smov %s480_s10 }
  0xc5   : > { %p15_p2 = scmp.ge.s32.totalorder %s18_s14, 4   ;;  %s672_s10 = smov %s484_s11 }
  0xc6   : > { %s673_s11 = smov %s573_s23  ;;  %s674_s12 = smov %s492_s13 }
  0xc7   : > { %s675_s13 = smov %s677_s17  ;;  %17 = sbr.rel (!%p15_p2) target bundleno = 6 (0x6), region = 73 }
  0xcc   :  { %245 = vsyncpa [#allocation3], 1 }
  0xcd   :  { %247 = vsyncpa [#allocation3 + $0x1], 1 }
  0xce   :  { %248 = vsyncpa [#allocation4], 1 }
  0xcf   :  { %250 = vsyncpa [#allocation4 + $0x1], 1 }

</bundles_post_ra>
